<compile_context>
chip_gen: v7x
topology: tpu7x:2x2x1
jax: 0.10.0
libtpu: 0.0.40
codegen_flags: <defaults>
</compile_context>

<pallas_src>
import functools

import jax
import jax.numpy as jnp
import numpy as np
from jax.experimental import pallas as pl
from jax.experimental.pallas import tpu as pltpu

# ----------------------------- configuration -----------------------------
NUM_NODE_FEATURES = 8      # num_node_features
GRA_ENC_L = 2              # gra_enc_l  (number of GINConv layers)
GRA_ENC_H = 32             # gra_enc_h  (hidden size)
GRA_ENC_MLP_L = 2          # gra_enc_mlp_l (Linear/BN/ReLU blocks per GIN MLP)
BN_EPS = 1e-5
GIN_EPS = 0.0              # GINConv default eps

H_PAD = 128                # lane-dense feature/hidden width (>= F and >= H)
N_PAD = 128                # lane-dense node-axis width (>= N_NODES)
G_PAD = 8                  # sublane-dense graph-axis width (>= N_GRAPHS)

# MXU operand dtype: bf16 operands + f32 accumulation is the right target on v6e/v7x
# (bf16-native MXU, half the weight footprint); on v5e only the dot operands are bf16 while
# all elementwise/BN math below stays f32.  Set to jnp.float32 to recover bit-tight f32.
MXU_DTYPE = jnp.bfloat16

N_NODES = 16               # total nodes across the batch of graphs
N_GRAPHS = 2               # number of graphs in the batch
NODES_PER_GRAPH = N_NODES // N_GRAPHS


# ------------------------------- kernel ----------------------------------
def _gin_encoder_kernel(n_layers, n_mlp, n_nodes, h_pad,
                        x_ref, a_ref, p_ref, w_ref, gb_ref, out_ref):
    """Single-invocation kernel; everything VMEM-resident at these toy shapes.

    x_ref   : (N_PAD, H_PAD) f32        node features, zero-padded rows/lanes
    a_ref   : (N_PAD, N_PAD) MXU_DTYPE  A_hat = (1+eps)I + A, zero-padded
    p_ref   : (G_PAD, N_PAD) MXU_DTYPE  one-hot global_add_pool matrix, zero-padded
    w_ref   : (L*M, H_PAD, H_PAD) MXU_DTYPE  packed Linear weights (bias folded away by BN)
    gb_ref  : (L*M, 2, H_PAD) f32       rows = [gamma, beta] per MLP sublayer
    out_ref : (G_PAD, L*H_PAD) f32      lane-dense output (real cols at l*H_PAD .. +GRA_ENC_H)
    """
    a_hat = a_ref[...]
    pool = p_ref[...]
    h = x_ref[...]                                   # f32 activations
    inv_n = 1.0 / float(n_nodes)

    idx = 0
    for layer in range(n_layers):
        # GINConv 'add' aggregation: (1+eps)*x_i + sum_{j in N(i)} x_j == A_hat @ h  (MXU).
        # Padded rows of h may be nonzero after the first layer, but the padded *columns*
        # of A_hat (and of P) are zero, so they never contribute to a real output.
        z = jnp.dot(a_hat, h.astype(a_hat.dtype), preferred_element_type=jnp.float32)
        for _ in range(n_mlp):
            w = w_ref[idx]                           # (H_PAD, H_PAD) bf16
            gb = gb_ref[idx]                         # (2, H_PAD) f32
            idx += 1
            gamma = gb[0:1, :]
            beta = gb[1:2, :]

            # Linear (MXU, bf16 operands, f32 accumulation).  Bias omitted: training-mode
            # BatchNorm subtracts the batch mean, so the bias cancels exactly.
            z = jnp.dot(z.astype(w.dtype), w, preferred_element_type=jnp.float32)

            # BatchNorm1d (training-mode batch statistics over the *real* node rows only),
            # two-pass moments, folded with ReLU into a single FMA + max (all f32).
            zr = z[:n_nodes, :]
            mean = jnp.sum(zr, axis=0, keepdims=True) * inv_n
            d = zr - mean
            var = jnp.sum(d * d, axis=0, keepdims=True) * inv_n
            scale = gamma * jax.lax.rsqrt(var + BN_EPS)
            shift = beta - mean * scale
            z = jnp.maximum(z * scale + shift, 0.0)  # BN affine + ReLU fused
        # Dropout p=0.0 -> identity.
        h = z
        # global_add_pool for this layer, written straight into its lane-dense 128-wide
        # output slab -> unmasked full-tile stores, no concatenate.
        out_ref[:, layer * h_pad:(layer + 1) * h_pad] = jnp.dot(
            pool, h.astype(pool.dtype), preferred_element_type=jnp.float32)


# ------------------------------- wrappers ----------------------------------
def pack_gin_params(params):
    """Pack per-sublayer (W, b, gamma, beta) into stacked, zero-padded kernel operands.

    Called once at setup (hoisted out of the per-call path).  The Linear bias is dropped:
    it is mathematically cancelled by the training-mode BatchNorm mean subtraction.
    Zero-padded weight columns / gamma=beta=0 keep padded lanes exactly zero end-to-end.
    """
    w_stack, gb_stack = [], []
    for layer_params in params:
        for (w, _b, g, be) in layer_params:
            d_in = w.shape[0]
            w_stack.append(jnp.zeros((H_PAD, H_PAD), jnp.float32)
                           .at[:d_in, :GRA_ENC_H].set(w))
            gb_stack.append(jnp.zeros((2, H_PAD), jnp.float32)
                            .at[0, :GRA_ENC_H].set(g)
                            .at[1, :GRA_ENC_H].set(be))
    w_all = jnp.stack(w_stack).astype(MXU_DTYPE)     # (L*M, H_PAD, H_PAD)
    gb_all = jnp.stack(gb_stack)                     # (L*M, 2, H_PAD) f32
    return w_all, gb_all


@functools.partial(jax.jit, static_argnames=("n_layers", "n_mlp"))
def gin_encoder_forward(x, a_hat, pool_mat, w_all, gb_all, *, n_layers, n_mlp):
    n_nodes, n_feat = x.shape
    n_graphs = pool_mat.shape[0]

    # Lane/sublane-dense zero padding (exact: zero rows/cols contribute nothing).
    x_pad = jnp.zeros((N_PAD, H_PAD), jnp.float32).at[:n_nodes, :n_feat].set(x)
    a_pad = (jnp.zeros((N_PAD, N_PAD), jnp.float32)
             .at[:n_nodes, :n_nodes].set(a_hat).astype(MXU_DTYPE))
    p_pad = (jnp.zeros((G_PAD, N_PAD), jnp.float32)
             .at[:n_graphs, :n_nodes].set(pool_mat).astype(MXU_DTYPE))

    kernel = functools.partial(_gin_encoder_kernel, n_layers, n_mlp, n_nodes, H_PAD)
    out_pad = pl.pallas_call(
        kernel,
        out_shape=jax.ShapeDtypeStruct((G_PAD, n_layers * H_PAD), jnp.float32),
        in_specs=[pl.BlockSpec(memory_space=pltpu.MemorySpace.VMEM)] * 5,
        out_specs=pl.BlockSpec(memory_space=pltpu.MemorySpace.VMEM),
        # No vmem_limit_bytes: footprint < 1 MiB, don't reserve scoped-VMEM headroom.
    )(x_pad, a_pad, p_pad, w_all, gb_all)

    # Strip sublane/lane padding in a single slice + reshape:
    # (G_PAD, L*H_PAD) -> (G, L, H_PAD) -> (G, L*H), matching torch.cat(pools, dim=1).
    out = out_pad[:n_graphs].reshape(n_graphs, n_layers, H_PAD)[:, :, :GRA_ENC_H]
    return out.reshape(n_graphs, n_layers * GRA_ENC_H)


# --------------------------- pure-JAX reference ----------------------------
def gin_encoder_reference(x, a_hat, pool_mat, params, mxu_dtype=None):
    """Torch-semantics reference (includes the Linear bias, standard BN form).

    With mxu_dtype=None everything is f32; with mxu_dtype=bf16 the matmul operands get the
    same rounding as the kernel, isolating structural bugs from deliberate quantization.
    """
    cast = (lambda t: t.astype(mxu_dtype)) if mxu_dtype is not None else (lambda t: t)
    h = x
    pools = []
    for layer_params in params:
        z = jnp.dot(cast(a_hat), cast(h), preferred_element_type=jnp.float32)
        for (w, b, g, be) in layer_params:
            z = jnp.dot(cast(z), cast(w), preferred_element_type=jnp.float32) + b[None, :]
            mean = z.mean(0, keepdims=True)
            var = ((z - mean) ** 2).mean(0, keepdims=True)
            z = (z - mean) / jnp.sqrt(var + BN_EPS)
            z = jnp.maximum(g[None, :] * z + be[None, :], 0.0)
        h = z
        pools.append(jnp.dot(cast(pool_mat), cast(h), preferred_element_type=jnp.float32))
    return jnp.concatenate(pools, axis=1)


# --------------------------------- main ------------------------------------
if __name__ == "__main__":
    key = jax.random.PRNGKey(0)

    # --- node features ---
    key, k_x = jax.random.split(key)
    x = jax.random.normal(k_x, (N_NODES, NUM_NODE_FEATURES), dtype=jnp.float32)

    # --- edge_index: bidirectional ring inside each graph (deterministic) ---
    src_list, dst_list = [], []
    for g in range(N_GRAPHS):
        off = g * NODES_PER_GRAPH
        for i in range(NODES_PER_GRAPH):
            j = (i + 1) % NODES_PER_GRAPH
            src_list += [off + i, off + j]
            dst_list += [off + j, off + i]
    src = jnp.asarray(src_list, dtype=jnp.int32)
    dst = jnp.asarray(dst_list, dtype=jnp.int32)

    # Dense adjacency for message passing: A[i, j] = #edges j -> i ; A_hat = (1+eps)I + A
    adj = jnp.zeros((N_NODES, N_NODES), dtype=jnp.float32).at[dst, src].add(1.0)
    a_hat = adj + (1.0 + GIN_EPS) * jnp.eye(N_NODES, dtype=jnp.float32)

    # --- seq_batch_node_id -> one-hot pooling matrix (global_add_pool) ---
    seq_batch_node_id = jnp.repeat(jnp.arange(N_GRAPHS, dtype=jnp.int32), NODES_PER_GRAPH)
    pool_mat = (seq_batch_node_id[None, :] == jnp.arange(N_GRAPHS, dtype=jnp.int32)[:, None]
                ).astype(jnp.float32)  # (G, N)

    # --- deterministic parameter init (PyTorch-style uniform Linear, BN gamma=1 beta=0) ---
    params = []
    for layer in range(GRA_ENC_L):
        layer_params = []
        for m in range(GRA_ENC_MLP_L):
            d_in = NUM_NODE_FEATURES if (layer == 0 and m == 0) else GRA_ENC_H
            bound = 1.0 / np.sqrt(d_in)
            key, kw, kb = jax.random.split(key, 3)
            w = jax.random.uniform(kw, (d_in, GRA_ENC_H), jnp.float32, -bound, bound)
            b = jax.random.uniform(kb, (GRA_ENC_H,), jnp.float32, -bound, bound)
            gamma = jnp.ones((GRA_ENC_H,), dtype=jnp.float32)
            beta = jnp.zeros((GRA_ENC_H,), dtype=jnp.float32)
            layer_params.append((w, b, gamma, beta))
        params.append(layer_params)

    # --- pack parameters once (hoisted out of the per-call path) ---
    w_all, gb_all = pack_gin_params(params)

    # --- run Pallas kernel ---
    graph_embeds = gin_encoder_forward(x, a_hat, pool_mat, w_all, gb_all,
                                       n_layers=GRA_ENC_L, n_mlp=GRA_ENC_MLP_L)
    graph_embeds = jax.block_until_ready(graph_embeds)

    assert graph_embeds.shape == (N_GRAPHS, GRA_ENC_L * GRA_ENC_H), graph_embeds.shape
    assert bool(jnp.all(jnp.isfinite(graph_embeds)))

    # 1) Structural check: reference with the *same* bf16 operand rounding (also validates
    #    that dropping the pre-BN bias and folding BN+ReLU is exact up to f32 rounding).
    ref_matched = jax.block_until_ready(
        gin_encoder_reference(x, a_hat, pool_mat, params, mxu_dtype=MXU_DTYPE))
    np.testing.assert_allclose(np.asarray(graph_embeds), np.asarray(ref_matched),
                               rtol=2e-3, atol=2e-3)

    # 2) Quantization-level check against the pure-f32 torch-semantics reference.
    ref_f32 = jax.block_until_ready(gin_encoder_reference(x, a_hat, pool_mat, params))
    np.testing.assert_allclose(np.asarray(graph_embeds), np.asarray(ref_f32),
                               rtol=1e-1, atol=1e-1)

    print("KERNEL_OK")
</pallas_src>

<mosaic_0001>
module attributes {stable_mosaic.version = 11 : i64} {
  func.func @_gin_encoder_kernel(%arg0: memref<128x128xf32, #tpu.memory_space<vmem>>, %arg1: memref<128x128xbf16, #tpu.memory_space<vmem>>, %arg2: memref<8x128xbf16, #tpu.memory_space<vmem>>, %arg3: memref<4x128x128xbf16, #tpu.memory_space<vmem>>, %arg4: memref<4x2x128xf32, #tpu.memory_space<vmem>>, %arg5: memref<8x256xf32, #tpu.memory_space<vmem>>) attributes {dimension_semantics = [], scalar_prefetch = 0 : i64, scratch_operands = 0 : i64, tpu.core_type = #tpu.core_type<tc>} {
    %c0 = arith.constant 0 : index
    %c0_0 = arith.constant 0 : index
    %0 = vector.load %arg1[%c0, %c0_0] : memref<128x128xbf16, #tpu.memory_space<vmem>>, vector<128x128xbf16>
    %c0_1 = arith.constant 0 : index
    %c0_2 = arith.constant 0 : index
    %1 = vector.load %arg2[%c0_1, %c0_2] : memref<8x128xbf16, #tpu.memory_space<vmem>>, vector<8x128xbf16>
    %c0_3 = arith.constant 0 : index
    %c0_4 = arith.constant 0 : index
    %2 = vector.load %arg0[%c0_3, %c0_4] : memref<128x128xf32, #tpu.memory_space<vmem>>, vector<128x128xf32>
    %3 = arith.truncf %2 : vector<128x128xf32> to vector<128x128xbf16>
    %cst = arith.constant dense<0.000000e+00> : vector<128x128xf32>
    %4 = tpu.matmul %0, %3, %cst {dimension_numbers = #tpu.dot_dimension_numbers<[1], [0], [0], [1], [0, 0, 1, 1], [], []>} : vector<128x128xbf16>, vector<128x128xbf16>, vector<128x128xf32> -> vector<128x128xf32>
    %c0_5 = arith.constant 0 : index
    %c0_6 = arith.constant 0 : index
    %c0_7 = arith.constant 0 : index
    %5 = vector.load %arg3[%c0_5, %c0_6, %c0_7] : memref<4x128x128xbf16, #tpu.memory_space<vmem>>, vector<1x128x128xbf16>
    %6 = vector.shape_cast %5 : vector<1x128x128xbf16> to vector<128x128xbf16>
    %c0_8 = arith.constant 0 : index
    %c0_9 = arith.constant 0 : index
    %c0_10 = arith.constant 0 : index
    %7 = vector.load %arg4[%c0_8, %c0_9, %c0_10] : memref<4x2x128xf32, #tpu.memory_space<vmem>>, vector<1x2x128xf32>
    %8 = vector.shape_cast %7 : vector<1x2x128xf32> to vector<2x128xf32>
    %9 = vector.extract_strided_slice %8 {offsets = [0, 0], sizes = [1, 128], strides = [1, 1]} : vector<2x128xf32> to vector<1x128xf32>
    %10 = vector.extract_strided_slice %8 {offsets = [1, 0], sizes = [1, 128], strides = [1, 1]} : vector<2x128xf32> to vector<1x128xf32>
    %11 = arith.truncf %4 : vector<128x128xf32> to vector<128x128xbf16>
    %cst_11 = arith.constant dense<0.000000e+00> : vector<128x128xf32>
    %12 = tpu.matmul %11, %6, %cst_11 {dimension_numbers = #tpu.dot_dimension_numbers<[1], [0], [0], [1], [0, 0, 1, 1], [], []>} : vector<128x128xbf16>, vector<128x128xbf16>, vector<128x128xf32> -> vector<128x128xf32>
    %13 = vector.extract_strided_slice %12 {offsets = [0, 0], sizes = [16, 128], strides = [1, 1]} : vector<128x128xf32> to vector<16x128xf32>
    %cst_12 = arith.constant dense<0.000000e+00> : vector<128xf32>
    %14 = vector.multi_reduction <add>, %13, %cst_12 [0] : vector<16x128xf32> to vector<128xf32>
    %15 = vector.shape_cast %14 : vector<128xf32> to vector<1x128xf32>
    %cst_13 = arith.constant 6.250000e-02 : f32
    %16 = vector.broadcast %cst_13 : f32 to vector<1x128xf32>
    %17 = arith.mulf %15, %16 : vector<1x128xf32>
    %18 = vector.broadcast %17 : vector<1x128xf32> to vector<16x128xf32>
    %19 = arith.subf %13, %18 : vector<16x128xf32>
    %20 = arith.mulf %19, %19 : vector<16x128xf32>
    %cst_14 = arith.constant dense<0.000000e+00> : vector<128xf32>
    %21 = vector.multi_reduction <add>, %20, %cst_14 [0] : vector<16x128xf32> to vector<128xf32>
    %22 = vector.shape_cast %21 : vector<128xf32> to vector<1x128xf32>
    %cst_15 = arith.constant 6.250000e-02 : f32
    %23 = vector.broadcast %cst_15 : f32 to vector<1x128xf32>
    %24 = arith.mulf %22, %23 : vector<1x128xf32>
    %cst_16 = arith.constant 9.99999974E-6 : f32
    %25 = vector.broadcast %cst_16 : f32 to vector<1x128xf32>
    %26 = arith.addf %24, %25 : vector<1x128xf32>
    %27 = math.rsqrt %26 : vector<1x128xf32>
    %28 = arith.mulf %9, %27 : vector<1x128xf32>
    %29 = arith.mulf %17, %28 : vector<1x128xf32>
    %30 = arith.subf %10, %29 : vector<1x128xf32>
    %31 = vector.broadcast %28 : vector<1x128xf32> to vector<128x128xf32>
    %32 = arith.mulf %12, %31 : vector<128x128xf32>
    %33 = vector.broadcast %30 : vector<1x128xf32> to vector<128x128xf32>
    %34 = arith.addf %32, %33 : vector<128x128xf32>
    %cst_17 = arith.constant 0.000000e+00 : f32
    %35 = vector.broadcast %cst_17 : f32 to vector<128x128xf32>
    %36 = arith.maximumf %34, %35 : vector<128x128xf32>
    %c1 = arith.constant 1 : index
    %c0_18 = arith.constant 0 : index
    %c0_19 = arith.constant 0 : index
    %37 = vector.load %arg3[%c1, %c0_18, %c0_19] : memref<4x128x128xbf16, #tpu.memory_space<vmem>>, vector<1x128x128xbf16>
    %38 = vector.shape_cast %37 : vector<1x128x128xbf16> to vector<128x128xbf16>
    %c1_20 = arith.constant 1 : index
    %c0_21 = arith.constant 0 : index
    %c0_22 = arith.constant 0 : index
    %39 = vector.load %arg4[%c1_20, %c0_21, %c0_22] : memref<4x2x128xf32, #tpu.memory_space<vmem>>, vector<1x2x128xf32>
    %40 = vector.shape_cast %39 : vector<1x2x128xf32> to vector<2x128xf32>
    %41 = vector.extract_strided_slice %40 {offsets = [0, 0], sizes = [1, 128], strides = [1, 1]} : vector<2x128xf32> to vector<1x128xf32>
    %42 = vector.extract_strided_slice %40 {offsets = [1, 0], sizes = [1, 128], strides = [1, 1]} : vector<2x128xf32> to vector<1x128xf32>
    %43 = arith.truncf %36 : vector<128x128xf32> to vector<128x128xbf16>
    %cst_23 = arith.constant dense<0.000000e+00> : vector<128x128xf32>
    %44 = tpu.matmul %43, %38, %cst_23 {dimension_numbers = #tpu.dot_dimension_numbers<[1], [0], [0], [1], [0, 0, 1, 1], [], []>} : vector<128x128xbf16>, vector<128x128xbf16>, vector<128x128xf32> -> vector<128x128xf32>
    %45 = vector.extract_strided_slice %44 {offsets = [0, 0], sizes = [16, 128], strides = [1, 1]} : vector<128x128xf32> to vector<16x128xf32>
    %cst_24 = arith.constant dense<0.000000e+00> : vector<128xf32>
    %46 = vector.multi_reduction <add>, %45, %cst_24 [0] : vector<16x128xf32> to vector<128xf32>
    %47 = vector.shape_cast %46 : vector<128xf32> to vector<1x128xf32>
    %cst_25 = arith.constant 6.250000e-02 : f32
    %48 = vector.broadcast %cst_25 : f32 to vector<1x128xf32>
    %49 = arith.mulf %47, %48 : vector<1x128xf32>
    %50 = vector.broadcast %49 : vector<1x128xf32> to vector<16x128xf32>
    %51 = arith.subf %45, %50 : vector<16x128xf32>
    %52 = arith.mulf %51, %51 : vector<16x128xf32>
    %cst_26 = arith.constant dense<0.000000e+00> : vector<128xf32>
    %53 = vector.multi_reduction <add>, %52, %cst_26 [0] : vector<16x128xf32> to vector<128xf32>
    %54 = vector.shape_cast %53 : vector<128xf32> to vector<1x128xf32>
    %cst_27 = arith.constant 6.250000e-02 : f32
    %55 = vector.broadcast %cst_27 : f32 to vector<1x128xf32>
    %56 = arith.mulf %54, %55 : vector<1x128xf32>
    %cst_28 = arith.constant 9.99999974E-6 : f32
    %57 = vector.broadcast %cst_28 : f32 to vector<1x128xf32>
    %58 = arith.addf %56, %57 : vector<1x128xf32>
    %59 = math.rsqrt %58 : vector<1x128xf32>
    %60 = arith.mulf %41, %59 : vector<1x128xf32>
    %61 = arith.mulf %49, %60 : vector<1x128xf32>
    %62 = arith.subf %42, %61 : vector<1x128xf32>
    %63 = vector.broadcast %60 : vector<1x128xf32> to vector<128x128xf32>
    %64 = arith.mulf %44, %63 : vector<128x128xf32>
    %65 = vector.broadcast %62 : vector<1x128xf32> to vector<128x128xf32>
    %66 = arith.addf %64, %65 : vector<128x128xf32>
    %cst_29 = arith.constant 0.000000e+00 : f32
    %67 = vector.broadcast %cst_29 : f32 to vector<128x128xf32>
    %68 = arith.maximumf %66, %67 : vector<128x128xf32>
    %69 = arith.truncf %68 : vector<128x128xf32> to vector<128x128xbf16>
    %cst_30 = arith.constant dense<0.000000e+00> : vector<8x128xf32>
    %70 = tpu.matmul %1, %69, %cst_30 {dimension_numbers = #tpu.dot_dimension_numbers<[1], [0], [0], [1], [0, 0, 1, 1], [], []>} : vector<8x128xbf16>, vector<128x128xbf16>, vector<8x128xf32> -> vector<8x128xf32>
    %c0_31 = arith.constant 0 : index
    %c0_32 = arith.constant 0 : index
    %71 = vector.load %arg5[%c0_31, %c0_32] : memref<8x256xf32, #tpu.memory_space<vmem>>, vector<8x128xf32>
    tpu.vector_store %arg5[%c0_31, %c0_32], %70 {strides = array<i32>} : memref<8x256xf32, #tpu.memory_space<vmem>>, vector<8x128xf32>,
    %72 = arith.truncf %68 : vector<128x128xf32> to vector<128x128xbf16>
    %cst_33 = arith.constant dense<0.000000e+00> : vector<128x128xf32>
    %73 = tpu.matmul %0, %72, %cst_33 {dimension_numbers = #tpu.dot_dimension_numbers<[1], [0], [0], [1], [0, 0, 1, 1], [], []>} : vector<128x128xbf16>, vector<128x128xbf16>, vector<128x128xf32> -> vector<128x128xf32>
    %c2 = arith.constant 2 : index
    %c0_34 = arith.constant 0 : index
    %c0_35 = arith.constant 0 : index
    %74 = vector.load %arg3[%c2, %c0_34, %c0_35] : memref<4x128x128xbf16, #tpu.memory_space<vmem>>, vector<1x128x128xbf16>
    %75 = vector.shape_cast %74 : vector<1x128x128xbf16> to vector<128x128xbf16>
    %c2_36 = arith.constant 2 : index
    %c0_37 = arith.constant 0 : index
    %c0_38 = arith.constant 0 : index
    %76 = vector.load %arg4[%c2_36, %c0_37, %c0_38] : memref<4x2x128xf32, #tpu.memory_space<vmem>>, vector<1x2x128xf32>
    %77 = vector.shape_cast %76 : vector<1x2x128xf32> to vector<2x128xf32>
    %78 = vector.extract_strided_slice %77 {offsets = [0, 0], sizes = [1, 128], strides = [1, 1]} : vector<2x128xf32> to vector<1x128xf32>
    %79 = vector.extract_strided_slice %77 {offsets = [1, 0], sizes = [1, 128], strides = [1, 1]} : vector<2x128xf32> to vector<1x128xf32>
    %80 = arith.truncf %73 : vector<128x128xf32> to vector<128x128xbf16>
    %cst_39 = arith.constant dense<0.000000e+00> : vector<128x128xf32>
    %81 = tpu.matmul %80, %75, %cst_39 {dimension_numbers = #tpu.dot_dimension_numbers<[1], [0], [0], [1], [0, 0, 1, 1], [], []>} : vector<128x128xbf16>, vector<128x128xbf16>, vector<128x128xf32> -> vector<128x128xf32>
    %82 = vector.extract_strided_slice %81 {offsets = [0, 0], sizes = [16, 128], strides = [1, 1]} : vector<128x128xf32> to vector<16x128xf32>
    %cst_40 = arith.constant dense<0.000000e+00> : vector<128xf32>
    %83 = vector.multi_reduction <add>, %82, %cst_40 [0] : vector<16x128xf32> to vector<128xf32>
    %84 = vector.shape_cast %83 : vector<128xf32> to vector<1x128xf32>
    %cst_41 = arith.constant 6.250000e-02 : f32
    %85 = vector.broadcast %cst_41 : f32 to vector<1x128xf32>
    %86 = arith.mulf %84, %85 : vector<1x128xf32>
    %87 = vector.broadcast %86 : vector<1x128xf32> to vector<16x128xf32>
    %88 = arith.subf %82, %87 : vector<16x128xf32>
    %89 = arith.mulf %88, %88 : vector<16x128xf32>
    %cst_42 = arith.constant dense<0.000000e+00> : vector<128xf32>
    %90 = vector.multi_reduction <add>, %89, %cst_42 [0] : vector<16x128xf32> to vector<128xf32>
    %91 = vector.shape_cast %90 : vector<128xf32> to vector<1x128xf32>
    %cst_43 = arith.constant 6.250000e-02 : f32
    %92 = vector.broadcast %cst_43 : f32 to vector<1x128xf32>
    %93 = arith.mulf %91, %92 : vector<1x128xf32>
    %cst_44 = arith.constant 9.99999974E-6 : f32
    %94 = vector.broadcast %cst_44 : f32 to vector<1x128xf32>
    %95 = arith.addf %93, %94 : vector<1x128xf32>
    %96 = math.rsqrt %95 : vector<1x128xf32>
    %97 = arith.mulf %78, %96 : vector<1x128xf32>
    %98 = arith.mulf %86, %97 : vector<1x128xf32>
    %99 = arith.subf %79, %98 : vector<1x128xf32>
    %100 = vector.broadcast %97 : vector<1x128xf32> to vector<128x128xf32>
    %101 = arith.mulf %81, %100 : vector<128x128xf32>
    %102 = vector.broadcast %99 : vector<1x128xf32> to vector<128x128xf32>
    %103 = arith.addf %101, %102 : vector<128x128xf32>
    %cst_45 = arith.constant 0.000000e+00 : f32
    %104 = vector.broadcast %cst_45 : f32 to vector<128x128xf32>
    %105 = arith.maximumf %103, %104 : vector<128x128xf32>
    %c3 = arith.constant 3 : index
    %c0_46 = arith.constant 0 : index
    %c0_47 = arith.constant 0 : index
    %106 = vector.load %arg3[%c3, %c0_46, %c0_47] : memref<4x128x128xbf16, #tpu.memory_space<vmem>>, vector<1x128x128xbf16>
    %107 = vector.shape_cast %106 : vector<1x128x128xbf16> to vector<128x128xbf16>
    %c3_48 = arith.constant 3 : index
    %c0_49 = arith.constant 0 : index
    %c0_50 = arith.constant 0 : index
    %108 = vector.load %arg4[%c3_48, %c0_49, %c0_50] : memref<4x2x128xf32, #tpu.memory_space<vmem>>, vector<1x2x128xf32>
    %109 = vector.shape_cast %108 : vector<1x2x128xf32> to vector<2x128xf32>
    %110 = vector.extract_strided_slice %109 {offsets = [0, 0], sizes = [1, 128], strides = [1, 1]} : vector<2x128xf32> to vector<1x128xf32>
    %111 = vector.extract_strided_slice %109 {offsets = [1, 0], sizes = [1, 128], strides = [1, 1]} : vector<2x128xf32> to vector<1x128xf32>
    %112 = arith.truncf %105 : vector<128x128xf32> to vector<128x128xbf16>
    %cst_51 = arith.constant dense<0.000000e+00> : vector<128x128xf32>
    %113 = tpu.matmul %112, %107, %cst_51 {dimension_numbers = #tpu.dot_dimension_numbers<[1], [0], [0], [1], [0, 0, 1, 1], [], []>} : vector<128x128xbf16>, vector<128x128xbf16>, vector<128x128xf32> -> vector<128x128xf32>
    %114 = vector.extract_strided_slice %113 {offsets = [0, 0], sizes = [16, 128], strides = [1, 1]} : vector<128x128xf32> to vector<16x128xf32>
    %cst_52 = arith.constant dense<0.000000e+00> : vector<128xf32>
    %115 = vector.multi_reduction <add>, %114, %cst_52 [0] : vector<16x128xf32> to vector<128xf32>
    %116 = vector.shape_cast %115 : vector<128xf32> to vector<1x128xf32>
    %cst_53 = arith.constant 6.250000e-02 : f32
    %117 = vector.broadcast %cst_53 : f32 to vector<1x128xf32>
    %118 = arith.mulf %116, %117 : vector<1x128xf32>
    %119 = vector.broadcast %118 : vector<1x128xf32> to vector<16x128xf32>
    %120 = arith.subf %114, %119 : vector<16x128xf32>
    %121 = arith.mulf %120, %120 : vector<16x128xf32>
    %cst_54 = arith.constant dense<0.000000e+00> : vector<128xf32>
    %122 = vector.multi_reduction <add>, %121, %cst_54 [0] : vector<16x128xf32> to vector<128xf32>
    %123 = vector.shape_cast %122 : vector<128xf32> to vector<1x128xf32>
    %cst_55 = arith.constant 6.250000e-02 : f32
    %124 = vector.broadcast %cst_55 : f32 to vector<1x128xf32>
    %125 = arith.mulf %123, %124 : vector<1x128xf32>
    %cst_56 = arith.constant 9.99999974E-6 : f32
    %126 = vector.broadcast %cst_56 : f32 to vector<1x128xf32>
    %127 = arith.addf %125, %126 : vector<1x128xf32>
    %128 = math.rsqrt %127 : vector<1x128xf32>
    %129 = arith.mulf %110, %128 : vector<1x128xf32>
    %130 = arith.mulf %118, %129 : vector<1x128xf32>
    %131 = arith.subf %111, %130 : vector<1x128xf32>
    %132 = vector.broadcast %129 : vector<1x128xf32> to vector<128x128xf32>
    %133 = arith.mulf %113, %132 : vector<128x128xf32>
    %134 = vector.broadcast %131 : vector<1x128xf32> to vector<128x128xf32>
    %135 = arith.addf %133, %134 : vector<128x128xf32>
    %cst_57 = arith.constant 0.000000e+00 : f32
    %136 = vector.broadcast %cst_57 : f32 to vector<128x128xf32>
    %137 = arith.maximumf %135, %136 : vector<128x128xf32>
    %138 = arith.truncf %137 : vector<128x128xf32> to vector<128x128xbf16>
    %cst_58 = arith.constant dense<0.000000e+00> : vector<8x128xf32>
    %139 = tpu.matmul %1, %138, %cst_58 {dimension_numbers = #tpu.dot_dimension_numbers<[1], [0], [0], [1], [0, 0, 1, 1], [], []>} : vector<8x128xbf16>, vector<128x128xbf16>, vector<8x128xf32> -> vector<8x128xf32>
    %c0_59 = arith.constant 0 : index
    %c128 = arith.constant 128 : index
    %140 = vector.load %arg5[%c0_59, %c128] : memref<8x256xf32, #tpu.memory_space<vmem>>, vector<8x128xf32>
    tpu.vector_store %arg5[%c0_59, %c128], %139 {strides = array<i32>} : memref<8x256xf32, #tpu.memory_space<vmem>>, vector<8x128xf32>,
    return
  }
}

</mosaic_0001>

<bundles_post_ra>
// kernel: gin_encoder_forward.1
= control target key start
LH: loop header
LB: loop body
LE: loop exit
PB: predicated region body
PF: predicated region fallthrough
CT: control target
= control target key end

     0   :  { %vm1916_vm0 = vmmov 0   ;;  %s2210_s0 = inlined_call_operand.vmem [shape: f32[128,128], index: 0, kind: input, shape index: {}]   ;;  %s2211_s1 = inlined_call_operand.vmem [shape: bf16[128,128], index: 1, kind: input, shape index: {}]   ;;  %s2212_s3 = inlined_call_operand.vmem [shape: bf16[4,128,128], index: 3, kind: input, shape index: {}]   ;;  %s2213_s4 = inlined_call_operand.vmem [shape: f32[4,2,128], index: 4, kind: input, shape index: {}]   ;;  %s2214_s2 = inlined_call_operand.vmem [shape: bf16[8,128], index: 2, kind: input, shape index: {}]   ;;  %s2215_s5 = inlined_call_operand.vmem [shape: f32[8,256], index: 5, kind: output, shape index: {}]  }
   0x1   :  { %v38_v0 = vld [vmem:[%s2210_s0] sm:$0xff]  ;;  %v39_v1 = vld [vmem:[%s2210_s0 + $0x8] sm:$0xff]  ;;  %v40_v2 = vld [vmem:[%s2210_s0 + $0x10] sm:$0xff] }
   0x2   :  { %v54_v3 = vpack.c.bf16 %v39_v1, %v38_v0  ;;  %v41_v4 = vld [vmem:[%s2210_s0 + $0x18] sm:$0xff]  ;;  %v42_v6 = vld [vmem:[%s2210_s0 + $0x20] sm:$0xff]  ;;  %v43_v7 = vld [vmem:[%s2210_s0 + $0x28] sm:$0xff] }
   0x3   :  { %v55_v5 = vpack.c.bf16 %v41_v4, %v40_v2  ;;  %v44_v8 = vld [vmem:[%s2210_s0 + $0x30] sm:$0xff]  ;;  %v56_v9 = vpack.c.bf16 %v43_v7, %v42_v6  ;;  %v45_v10 = vld [vmem:[%s2210_s0 + $0x38] sm:$0xff]  ;;  %v1974_v11 = vld [vmem:[%s2211_s1] sm:$0xff]  }
   0x4   :  { %1633 = vmatprep.subr.bf16.mxu0 %v54_v3  ;;  %1649 = vmatprep.mubr.bf16.mxu0 %v1974_v11  ;;  %v57_v12 = vpack.c.bf16 %v45_v10, %v44_v8  ;;  %v46_v13 = vld [vmem:[%s2210_s0 + $0x40] sm:$0xff]  ;;  %v47_v14 = vld [vmem:[%s2210_s0 + $0x48] sm:$0xff]  ;;  %v48_v15 = vld [vmem:[%s2210_s0 + $0x50] sm:$0xff] }
   0x5   :  { %1634 = vmatpush3.bf16.msra.mxu0 %v54_v3  ;;  %v58_v16 = vpack.c.bf16 %v47_v14, %v46_v13  ;;  %v49_v17 = vld [vmem:[%s2210_s0 + $0x58] sm:$0xff]  ;;  %v1875_v18 = vld [vmem:[%s2212_s3] sm:$0xff]   ;;  %v1876_v19 = vld [vmem:[%s2212_s3 + $0x8] sm:$0xff]  }
   0x6   :  { %1635 = vmatprep.subr.bf16.mxu0 %v55_v5  ;;  %v50_v20 = vld [vmem:[%s2210_s0 + $0x60] sm:$0xff]  ;;  %1665 = vmatprep.subr.bf16.mxu1 %v1875_v18  ;;  %v59_v21 = vpack.c.bf16 %v49_v17, %v48_v15  ;;  %v51_v22 = vld [vmem:[%s2210_s0 + $0x68] sm:$0xff]  ;;  %v1877_v23 = vld [vmem:[%s2212_s3 + $0x10] sm:$0xff]  }
   0x7   :  { %1666 = vmatpush3.bf16.msra.mxu1 %v1875_v18  ;;  %v52_v24 = vld [vmem:[%s2210_s0 + $0x70] sm:$0xff]  ;;  %v53_v25 = vld [vmem:[%s2210_s0 + $0x78] sm:$0xff]  ;;  %v60_v27 = vpack.c.bf16 %v51_v22, %v50_v20  ;;  %v1879_v28 = vld [vmem:[%s2212_s3 + $0x20] sm:$0xff]  }
   0x8   :  { %1667 = vmatprep.subr.bf16.mxu1 %v1876_v19  ;;  %v1878_v26 = vld [vmem:[%s2212_s3 + $0x18] sm:$0xff]   ;;  %v61_v29 = vpack.c.bf16 %v53_v25, %v52_v24  ;;  %v1880_v30 = vld [vmem:[%s2212_s3 + $0x28] sm:$0xff]   ;;  %v2027_v32 = vld [vmem:[%s2211_s1 + $0x10] sm:$0xff]  }
   0x9   :  { %1636 = vmatpush3.bf16.msra.mxu0 %v55_v5  ;;  %v2022_v31 = vld [vmem:[%s2211_s1 + $0x8] sm:$0xff]   ;;  %v1881_v33 = vld [vmem:[%s2212_s3 + $0x30] sm:$0xff]   ;;  %v2037_v34 = vld [vmem:[%s2211_s1 + $0x18] sm:$0xff]  }
   0xa   :  { %1637 = vmatprep.subr.bf16.mxu0 %v56_v9  ;;  %v2042_v35 = vld [vmem:[%s2211_s1 + $0x20] sm:$0xff]   ;;  %v2049_v36 = vld [vmem:[%s2211_s1 + $0x28] sm:$0xff]   ;;  %v2054_v37 = vld [vmem:[%s2211_s1 + $0x30] sm:$0xff]  }
   0xb   :  { %1668 = vmatpush3.bf16.msra.mxu1 %v1876_v19  ;;  %v2061_v38 = vld [vmem:[%s2211_s1 + $0x38] sm:$0xff]   ;;  %v1883_v0 = vld [vmem:[%s2212_s3 + $0x40] sm:$0xff]   ;;  %v1884_v1 = vld [vmem:[%s2212_s3 + $0x48] sm:$0xff]  }
   0xc   :  { %1669 = vmatprep.subr.bf16.mxu1 %v1877_v23  ;;  %v1882_v39 = vld [vmem:[%s2212_s3 + $0x38] sm:$0xff]   ;;  %v1885_v2 = vld [vmem:[%s2212_s3 + $0x50] sm:$0xff]   ;;  %v1887_v4 = vld [vmem:[%s2212_s3 + $0x60] sm:$0xff]  }
   0xd   :  { %1638 = vmatpush3.bf16.msra.mxu0 %v56_v9  ;;  %v1886_v3 = vld [vmem:[%s2212_s3 + $0x58] sm:$0xff]   ;;  %v1888_v5 = vld [vmem:[%s2212_s3 + $0x68] sm:$0xff]   ;;  %v1889_v6 = vld [vmem:[%s2212_s3 + $0x70] sm:$0xff]  }
   0xe   :  { %1639 = vmatprep.subr.bf16.mxu0 %v57_v12  ;;  %v1890_v7 = vld [vmem:[%s2212_s3 + $0x78] sm:$0xff]  }
   0xf   :  { %1670 = vmatpush3.bf16.msra.mxu1 %v1877_v23 }
  0x10   :  { %1671 = vmatprep.subr.bf16.mxu1 %v1878_v26 }
  0x11   :  { %1640 = vmatpush3.bf16.msra.mxu0 %v57_v12 }
  0x12   :  { %1641 = vmatprep.subr.bf16.mxu0 %v58_v16 }
  0x13   :  { %1672 = vmatpush3.bf16.msra.mxu1 %v1878_v26 }
  0x14   :  { %1673 = vmatprep.subr.bf16.mxu1 %v1879_v28 }
  0x15   :  { %1642 = vmatpush3.bf16.msra.mxu0 %v58_v16 }
  0x16   :  { %1643 = vmatprep.subr.bf16.mxu0 %v59_v21 }
  0x17   :  { %1674 = vmatpush3.bf16.msra.mxu1 %v1879_v28 }
  0x18   :  { %1675 = vmatprep.subr.bf16.mxu1 %v1880_v30 }
  0x19   :  { %1644 = vmatpush3.bf16.msra.mxu0 %v59_v21 }
  0x1a   :  { %1645 = vmatprep.subr.bf16.mxu0 %v60_v27 }
  0x1b   :  { %1676 = vmatpush3.bf16.msra.mxu1 %v1880_v30 }
  0x1c   :  { %1677 = vmatprep.subr.bf16.mxu1 %v1881_v33 }
  0x1d   :  { %1646 = vmatpush3.bf16.msra.mxu0 %v60_v27 }
  0x1e   :  { %1647 = vmatprep.subr.bf16.mxu0 %v61_v29 }
  0x1f   :  { %1678 = vmatpush3.bf16.msra.mxu1 %v1881_v33 }
  0x20   :  { %1679 = vmatprep.subr.bf16.mxu1 %v1882_v39 }
  0x21   :  { %1648 = vmatpush3.bf16.msra.mxu0 %v61_v29 }
  0x22   :  { %1697 = vmatprep.subr.bf16.mxu0 %v1883_v0 }
  0x23   :  { %1680 = vmatpush3.bf16.msra.mxu1 %v1882_v39 }
  0x24   :  { %1650 = vmatmul.mubr.bf16.vlgmr.msra.gmra.mrb[0].mxu0 %v2022_v31 }
  0x25   :  { %1653 = vmatprep.mubr.bf16.mxu0 %v2027_v32  ;;  %1698 = vmatpush3.bf16.msra.mxu0 %v1883_v0 }
  0x26   :  { %1699 = vmatprep.subr.bf16.mxu0 %v1884_v1 }
  0x29   :  { %1700 = vmatpush3.bf16.msra.mxu0 %v1884_v1 }
  0x2a   :  { %1701 = vmatprep.subr.bf16.mxu0 %v1885_v2 }
  0x2c   :  { %1654 = vmatmul.mubr.bf16.gmra.mrb[4].mxu0 %v2037_v34 }
  0x2d   :  { %1657 = vmatprep.mubr.bf16.mxu0 %v2042_v35  ;;  %1702 = vmatpush3.bf16.msra.mxu0 %v1885_v2 }
  0x2e   :  { %1703 = vmatprep.subr.bf16.mxu0 %v1886_v3 }
  0x31   :  { %1704 = vmatpush3.bf16.msra.mxu0 %v1886_v3 }
  0x32   :  { %1705 = vmatprep.subr.bf16.mxu0 %v1887_v4 }
  0x34   :  { %1658 = vmatmul.mubr.bf16.gmra.mrb[8].mxu0 %v2049_v36 }
  0x35   :  { %1661 = vmatprep.mubr.bf16.mxu0 %v2054_v37  ;;  %1706 = vmatpush3.bf16.msra.mxu0 %v1887_v4 }
  0x36   :  { %1707 = vmatprep.subr.bf16.mxu0 %v1888_v5 }
  0x39   :  { %1708 = vmatpush3.bf16.msra.mxu0 %v1888_v5 }
  0x3a   :  { %1709 = vmatprep.subr.bf16.mxu0 %v1889_v6 }
  0x3c   :  { %1662 = vmatmul.mubr.bf16.gmra.mrb[12].mxu0 %v2061_v38 }
  0x3d   :  { %1710 = vmatpush3.bf16.msra.mxu0 %v1889_v6 }
  0x3e   :  { %1711 = vmatprep.subr.bf16.mxu0 %v1890_v7 }
  0x41   :  { %1712 = vmatpush3.bf16.msra.mxu0 %v1890_v7 }
  0xf7   :  { %v1651_v40 = vpop.f32.mrb[0].mxu0 }
  0xf8   :  { %v144_v41 = vpop.f32.mrb[1].mxu0 }
  0xf9   :  { %v1652_v42 = vpop.f32.mrb[2].mxu0 }
  0xfa   :  { %v225_v43 = vpack.c.bf16 %v1652_v42, %v1651_v40  ;;  %v147_v44 = vpop.f32.mrb[3].mxu0 }
  0xfb   :  { %v224_v45 = vpack.c.bf16 %v147_v44, %v144_v41 }
  0xfd   :  { %1681 = vmatprep.mubr.bf16.mxu1 %v224_v45 }
  0xfe   :  { %1682 = vmatmul.mubr.bf16.vlgmr.msra.gmra.mrb[0].mxu1 %v225_v43 }
  0xff   :  { %v1655_v46 = vpop.f32.mrb[4].mxu0 }
 0x100   :  { %v160_v47 = vpop.f32.mrb[5].mxu0 }
 0x101   :  { %v1656_v48 = vpop.f32.mrb[6].mxu0 }
 0x102   :  { %v227_v49 = vpack.c.bf16 %v1656_v48, %v1655_v46  ;;  %v163_v50 = vpop.f32.mrb[7].mxu0 }
 0x103   :  { %v226_v51 = vpack.c.bf16 %v163_v50, %v160_v47 }
 0x105   :  { %1685 = vmatprep.mubr.bf16.mxu1 %v226_v51 }
 0x106   :  { %1686 = vmatmul.mubr.bf16.gmra.mrb[4].mxu1 %v227_v49 }
 0x107   :  { %v1659_v52 = vpop.f32.mrb[8].mxu0 }
 0x108   :  { %v176_v53 = vpop.f32.mrb[9].mxu0 }
 0x109   :  { %v1660_v54 = vpop.f32.mrb[10].mxu0 }
 0x10a   :  { %v229_v55 = vpack.c.bf16 %v1660_v54, %v1659_v52  ;;  %v179_v56 = vpop.f32.mrb[11].mxu0 }
 0x10b   :  { %v228_v57 = vpack.c.bf16 %v179_v56, %v176_v53  ;;  %v405_v53 = vlaneseq }
 0x10d   :  { %1689 = vmatprep.mubr.bf16.mxu1 %v228_v57  ;;  %v406_v54 = vshrl.u32 %v405_v53, 7 }
 0x10e   :  { %1690 = vmatmul.mubr.bf16.gmra.mrb[8].mxu1 %v229_v55  ;;  %v223_v55 = vld [vmem:[%s2213_s4] sm:$0x3] }
 0x10f   :  { %v1663_v58 = vpop.f32.mrb[12].mxu0  ;;  %v2098_v56 = vsub.s32 0, %v406_v54 }
 0x110   :  { %v192_v59 = vpop.f32.mrb[13].mxu0 }
 0x111   :  { %v1664_v60 = vpop.f32.mrb[14].mxu0 }
 0x112   :  { %v231_v61 = vpack.c.bf16 %v1664_v60, %v1663_v58  ;;  %v195_v62 = vpop.f32.mrb[15].mxu0 }
 0x113   :  { %v230_v63 = vpack.c.bf16 %v195_v62, %v192_v59 }
 0x115   :  { %1693 = vmatprep.mubr.bf16.mxu1 %v230_v63 }
 0x116   :  { %1694 = vmatmul.mubr.bf16.gmra.mrb[12].mxu1 %v231_v61  ;;  %v2101_v61 = vsub.s32 1, %v406_v54 }
 0x1d1   :  { %v2091_v8 = vpop.f32.mrb[0].mxu1 }
 0x1d2   :  { %v314_v9 = vpop.f32.mrb[1].mxu1 }
 0x1d3   :  { %v2093_v10 = vpop.f32.mrb[2].mxu1 }
 0x1d4   :  { %v317_v12 = vpop.f32.mrb[3].mxu1 }
 0x1d5   :  { %v377_v13 = vadd.f32 %v317_v12, %v314_v9 }
 0x1d7   :  { %v378_v14 = vrot.slane %v377_v13, 4 }
 0x1d9   :  { %v379_v15 = vadd.f32 %v378_v14, %v377_v13  ;;  %v1687_v16 = vpop.f32.mrb[4].mxu1 }
 0x1da   :  { %v330_v17 = vpop.f32.mrb[5].mxu1 }
 0x1db   :  { %v380_v18 = vrot.slane %v379_v15, 2  ;;  %v1688_v19 = vpop.f32.mrb[6].mxu1 }
 0x1dc   :  { %v333_v20 = vpop.f32.mrb[7].mxu1 }
 0x1dd   :  { %v381_v21 = vadd.f32 %v380_v18, %v379_v15 }
 0x1df   :  { %v382_v22 = vrot.slane %v381_v21, 1 }
 0x1e1   :  { %v383_v23 = vadd.f32 %v382_v22, %v381_v21  ;;  %v1691_v24 = vpop.f32.mrb[8].mxu1 }
 0x1e2   :  { %v346_v25 = vpop.f32.mrb[9].mxu1 }
 0x1e3   :  { %v384_v26 = vmul.f32 0.0625, %v383_v23  ;;  %v1692_v27 = vpop.f32.mrb[10].mxu1 }
 0x1e4   :  { %v349_v28 = vpop.f32.mrb[11].mxu1 }
 0x1e5   :  { %v385_v29 = vsub.f32 %v314_v9, %v384_v26  ;;  %v386_v30 = vsub.f32 %v317_v12, %v384_v26 }
 0x1e7   :  { %v387_v33 = vmul.f32 %v385_v29, %v385_v29  ;;  %v388_v39 = vmul.f32 %v386_v30, %v386_v30 }
 0x1e9   :  { %v389_v40 = vadd.f32 %v388_v39, %v387_v33  ;;  %v1695_v41 = vpop.f32.mrb[12].mxu1 }
 0x1ea   :  { %v362_v42 = vpop.f32.mrb[13].mxu1 }
 0x1eb   :  { %v390_v43 = vrot.slane %v389_v40, 4  ;;  %v1696_v44 = vpop.f32.mrb[14].mxu1 }
 0x1ec   :  { %v365_v45 = vpop.f32.mrb[15].mxu1 }
 0x1ed   :  { %v391_v46 = vadd.f32 %v390_v43, %v389_v40 }
 0x1ef   :  { %v392_v47 = vrot.slane %v391_v46, 2 }
 0x1f1   :  { %v393_v48 = vadd.f32 %v392_v47, %v391_v46 }
 0x1f3   :  { %v394_v49 = vrot.slane %v393_v48, 1 }
 0x1f5   :  { %v395_v50 = vadd.f32 %v394_v49, %v393_v48 }
 0x1f7   :  { %v396_v51 = vmul.f32 0.0625, %v395_v50 }
 0x1f9   :  { %v397_v52 = vadd.f32 1e-05, %v396_v51 }
 0x1fb   :  { %1907 = vrsqrt.f32 %v397_v52 }
 0x205   :  { %v1908_v57 = vpop.eup %1907 }
 0x206   :  { %v399_v58 = vmul.f32 %v1908_v57, %v223_v55 }
 0x208   :  { %v400_v59 = vmul.f32 %v399_v58, %v384_v26  ;;  %v408_v60 = vrot.slane %v399_v58, %v2098_v56 }
 0x20a   :  { %v402_v62 = vrot.slane %v400_v59, 7  ;;  %v410_v63 = vmul.f32 %v408_v60, %v317_v12  ;;  %v415_v0 = vmul.f32 %v1687_v16, %v408_v60  ;;  %v413_v1 = vmul.f32 %v408_v60, %v330_v17 }
 0x20b   :  { %v416_v2 = vmul.f32 %v1688_v19, %v408_v60  ;;  %v414_v3 = vmul.f32 %v408_v60, %v333_v20  ;;  %v419_v4 = vmul.f32 %v1691_v24, %v408_v60  ;;  %v417_v5 = vmul.f32 %v408_v60, %v346_v25 }
 0x20c   :  { %v404_v6 = vsub.f32 %v223_v55, %v402_v62  ;;  %v420_v7 = vmul.f32 %v1692_v27, %v408_v60  ;;  %v418_v13 = vmul.f32 %v408_v60, %v349_v28  ;;  %v423_v14 = vmul.f32 %v1695_v41, %v408_v60 }
 0x20d   :  { %v421_v15 = vmul.f32 %v408_v60, %v362_v42  ;;  %v424_v18 = vmul.f32 %v1696_v44, %v408_v60  ;;  %v422_v21 = vmul.f32 %v408_v60, %v365_v45  ;;  %v409_v22 = vmul.f32 %v408_v60, %v314_v9 }
 0x20e   :  { %v428_v23 = vrot.slane %v404_v6, %v2101_v61  ;;  %v411_v26 = vmul.f32 %v2091_v8, %v408_v60  ;;  %v412_v12 = vmul.f32 %v2093_v10, %v408_v60 }
 0x210   :  { %v430_v16 = vadd.f32 %v428_v23, %v410_v63  ;;  %v435_v17 = vadd.f32 %v428_v23, %v415_v0  ;;  %v433_v19 = vadd.f32 %v428_v23, %v413_v1  ;;  %v436_v20 = vadd.f32 %v428_v23, %v416_v2 }
 0x211   :  { %v434_v24 = vadd.f32 %v428_v23, %v414_v3  ;;  %v439_v25 = vadd.f32 %v428_v23, %v419_v4  ;;  %v437_v29 = vadd.f32 %v428_v23, %v417_v5  ;;  %v440_v27 = vadd.f32 %v428_v23, %v420_v7 }
 0x212   :  { %v451_v28 = vmax.f32 %v435_v17, 0.0  ;;  %v449_v30 = vmax.f32 %v433_v19, 0.0  ;;  %v452_v33 = vmax.f32 %v436_v20, 0.0  ;;  %v438_v39 = vadd.f32 %v428_v23, %v418_v13 }
 0x213   :  { %v450_v40 = vmax.f32 %v434_v24, 0.0  ;;  %v455_v9 = vmax.f32 %v439_v25, 0.0  ;;  %v453_v41 = vmax.f32 %v437_v29, 0.0  ;;  %v456_v42 = vmax.f32 %v440_v27, 0.0 }
 0x214   :  { %v454_v43 = vmax.f32 %v438_v39, 0.0  ;;  %v443_v8 = vadd.f32 %v428_v23, %v423_v14  ;;  %v441_v44 = vadd.f32 %v428_v23, %v421_v15  ;;  %v444_v10 = vadd.f32 %v428_v23, %v424_v18 }
 0x215   :  { %v442_v45 = vadd.f32 %v428_v23, %v422_v21  ;;  %v429_v46 = vadd.f32 %v428_v23, %v409_v22  ;;  %v446_v47 = vmax.f32 %v430_v16, 0.0  ;;  %v431_v48 = vadd.f32 %v428_v23, %v411_v26 }
 0x216   :  { %v459_v49 = vmax.f32 %v443_v8, 0.0  ;;  %v457_v50 = vmax.f32 %v441_v44, 0.0  ;;  %v460_v51 = vmax.f32 %v444_v10, 0.0  ;;  %v432_v52 = vadd.f32 %v428_v23, %v412_v12 }
 0x217   :  { %v458_v53 = vmax.f32 %v442_v45, 0.0  ;;  %v445_v54 = vmax.f32 %v429_v46, 0.0  ;;  %v447_v55 = vmax.f32 %v431_v48, 0.0  ;;  %v482_v57 = vpack.c.bf16 %v450_v40, %v449_v30  ;;  %v1460_v48 = vld [vmem:[%s2213_s4 + $0x2] sm:$0x3] }
 0x218   :  { %v448_v58 = vmax.f32 %v432_v52, 0.0  ;;  %v483_v59 = vpack.c.bf16 %v452_v33, %v451_v28  ;;  %v484_v60 = vpack.c.bf16 %v454_v43, %v453_v41  ;;  %v485_v62 = vpack.c.bf16 %v456_v42, %v455_v9 }
 0x219   :  { %v480_v63 = vpack.c.bf16 %v446_v47, %v445_v54  ;;  %v486_v0 = vpack.c.bf16 %v458_v53, %v457_v50  ;;  %v487_v1 = vpack.c.bf16 %v460_v51, %v459_v49  ;;  %v1915_v3 = vmov 0.0  }
 0x21a   :  { %v481_v2 = vpack.c.bf16 %v448_v58, %v447_v55  ;;  %1729 = vmatprep.subr.bf16.mxu1 %v1915_v3  ;;  %1745 = vmatprep.mubr.msk.bf16.mxu1 %vm1916_vm0, %v1915_v3 }
 0x21b   :  { %1713 = vmatprep.mubr.bf16.mxu0 %v480_v63 }
 0x21c   :  { %1714 = vmatmul.mubr.bf16.vlgmr.msra.gmra.mrb[16].mxu0 %v481_v2 }
 0x21d   :  { %1717 = vmatprep.mubr.bf16.mxu0 %v482_v57 }
 0x224   :  { %1718 = vmatmul.mubr.bf16.gmra.mrb[20].mxu0 %v483_v59 }
 0x225   :  { %1721 = vmatprep.mubr.bf16.mxu0 %v484_v60 }
 0x22c   :  { %1722 = vmatmul.mubr.bf16.gmra.mrb[24].mxu0 %v485_v62 }
 0x22d   :  { %1725 = vmatprep.mubr.bf16.mxu0 %v486_v0 }
 0x234   :  { %1726 = vmatmul.mubr.bf16.gmra.mrb[28].mxu0 %v487_v1 }
 0x235   :  { %1765 = vmatprep.mubr.bf16.mxu0 %v1974_v11 }
 0x2ef   :  { %v1715_v4 = vpop.f32.mrb[16].mxu0 }
 0x2f0   :  { %v570_v5 = vpop.f32.mrb[17].mxu0 }
 0x2f1   :  { %v1716_v6 = vpop.f32.mrb[18].mxu0 }
 0x2f2   :  { %v573_v7 = vpop.f32.mrb[19].mxu0 }
 0x2f3   :  { %v633_v13 = vadd.f32 %v573_v7, %v570_v5 }
 0x2f5   :  { %v634_v14 = vrot.slane %v633_v13, 4 }
 0x2f7   :  { %v635_v15 = vadd.f32 %v634_v14, %v633_v13  ;;  %v1719_v18 = vpop.f32.mrb[20].mxu0 }
 0x2f8   :  { %v586_v21 = vpop.f32.mrb[21].mxu0 }
 0x2f9   :  { %v636_v22 = vrot.slane %v635_v15, 2  ;;  %v1720_v23 = vpop.f32.mrb[22].mxu0 }
 0x2fa   :  { %v589_v26 = vpop.f32.mrb[23].mxu0 }
 0x2fb   :  { %v637_v11 = vadd.f32 %v636_v22, %v635_v15 }
 0x2fd   :  { %v638_v12 = vrot.slane %v637_v11, 1 }
 0x2ff   :  { %v639_v16 = vadd.f32 %v638_v12, %v637_v11  ;;  %v1723_v17 = vpop.f32.mrb[24].mxu0 }
 0x300   :  { %v602_v19 = vpop.f32.mrb[25].mxu0 }
 0x301   :  { %v640_v20 = vmul.f32 0.0625, %v639_v16  ;;  %v1724_v24 = vpop.f32.mrb[26].mxu0 }
 0x302   :  { %v605_v25 = vpop.f32.mrb[27].mxu0 }
 0x303   :  { %v641_v29 = vsub.f32 %v570_v5, %v640_v20  ;;  %v642_v27 = vsub.f32 %v573_v7, %v640_v20 }
 0x305   :  { %v643_v28 = vmul.f32 %v641_v29, %v641_v29  ;;  %v644_v30 = vmul.f32 %v642_v27, %v642_v27 }
 0x307   :  { %v645_v33 = vadd.f32 %v644_v30, %v643_v28  ;;  %v1727_v39 = vpop.f32.mrb[28].mxu0 }
 0x308   :  { %v618_v40 = vpop.f32.mrb[29].mxu0 }
 0x309   :  { %v646_v9 = vrot.slane %v645_v33, 4  ;;  %v1728_v41 = vpop.f32.mrb[30].mxu0 }
 0x30a   :  { %v621_v42 = vpop.f32.mrb[31].mxu0 }
 0x30b   :  { %v647_v43 = vadd.f32 %v646_v9, %v645_v33 }
 0x30d   :  { %v648_v8 = vrot.slane %v647_v43, 2 }
 0x30f   :  { %v649_v44 = vadd.f32 %v648_v8, %v647_v43 }
 0x311   :  { %v650_v10 = vrot.slane %v649_v44, 1 }
 0x313   :  { %v651_v45 = vadd.f32 %v650_v10, %v649_v44 }
 0x315   :  { %v652_v46 = vmul.f32 0.0625, %v651_v45 }
 0x317   :  { %v653_v47 = vadd.f32 1e-05, %v652_v46 }
 0x319   :  { %1909 = vrsqrt.f32 %v653_v47 }
 0x323   :  { %v1910_v49 = vpop.eup %1909 }
 0x324   :  { %v655_v50 = vmul.f32 %v1910_v49, %v1460_v48 }
 0x326   :  { %v656_v51 = vmul.f32 %v655_v50, %v640_v20  ;;  %v664_v52 = vrot.slane %v655_v50, %v2098_v56 }
 0x328   :  { %v658_v53 = vrot.slane %v656_v51, 7  ;;  %v666_v54 = vmul.f32 %v664_v52, %v573_v7  ;;  %v671_v55 = vmul.f32 %v1719_v18, %v664_v52  ;;  %v669_v57 = vmul.f32 %v664_v52, %v586_v21 }
 0x329   :  { %v672_v58 = vmul.f32 %v1720_v23, %v664_v52  ;;  %v670_v59 = vmul.f32 %v664_v52, %v589_v26  ;;  %v675_v60 = vmul.f32 %v1723_v17, %v664_v52  ;;  %v673_v62 = vmul.f32 %v664_v52, %v602_v19 }
 0x32a   :  { %v660_v63 = vsub.f32 %v1460_v48, %v658_v53  ;;  %v676_v0 = vmul.f32 %v1724_v24, %v664_v52  ;;  %v674_v1 = vmul.f32 %v664_v52, %v605_v25  ;;  %v679_v2 = vmul.f32 %v1727_v39, %v664_v52 }
 0x32b   :  { %v677_v13 = vmul.f32 %v664_v52, %v618_v40  ;;  %v680_v14 = vmul.f32 %v1728_v41, %v664_v52  ;;  %v678_v15 = vmul.f32 %v664_v52, %v621_v42  ;;  %v665_v22 = vmul.f32 %v664_v52, %v570_v5 }
 0x32c   :  { %v684_v11 = vrot.slane %v660_v63, %v2101_v61  ;;  %v667_v12 = vmul.f32 %v1715_v4, %v664_v52  ;;  %v668_v16 = vmul.f32 %v1716_v6, %v664_v52  ;;  %v1893_v63 = vld [vmem:[%s2212_s3 + $0x90] sm:$0xff]  }
 0x32e   :  { %v686_v20 = vadd.f32 %v684_v11, %v666_v54  ;;  %v691_v7 = vadd.f32 %v684_v11, %v671_v55  ;;  %v689_v18 = vadd.f32 %v684_v11, %v669_v57  ;;  %v692_v21 = vadd.f32 %v684_v11, %v672_v58 }
 0x32f   :  { %v690_v23 = vadd.f32 %v684_v11, %v670_v59  ;;  %v695_v26 = vadd.f32 %v684_v11, %v675_v60  ;;  %v693_v17 = vadd.f32 %v684_v11, %v673_v62  ;;  %v696_v19 = vadd.f32 %v684_v11, %v676_v0  ;;  %v1891_v59 = vld [vmem:[%s2212_s3 + $0x80] sm:$0xff]   ;;  %v1892_v62 = vld [vmem:[%s2212_s3 + $0x88] sm:$0xff]   ;;  %v1894_v0 = vld [vmem:[%s2212_s3 + $0x98] sm:$0xff]  }
 0x330   :  { %v702_v29 = vmax.f32 %v686_v20, 0.0  ;;  %v707_v24 = vmax.f32 %v691_v7, 0.0  ;;  %v705_v25 = vmax.f32 %v689_v18, 0.0  ;;  %v708_v27 = vmax.f32 %v692_v21, 0.0  ;;  %v2128_v60 = vld [vmem:[%s2214_s2] sm:$0xf] }
 0x331   :  { %v706_v28 = vmax.f32 %v690_v23, 0.0  ;;  %v711_v30 = vmax.f32 %v695_v26, 0.0  ;;  %v709_v33 = vmax.f32 %v693_v17, 0.0  ;;  %v712_v5 = vmax.f32 %v696_v19, 0.0 }
 0x332   :  { %v694_v39 = vadd.f32 %v684_v11, %v674_v1  ;;  %v699_v40 = vadd.f32 %v684_v11, %v679_v2  ;;  %v697_v4 = vadd.f32 %v684_v11, %v677_v13  ;;  %v700_v6 = vadd.f32 %v684_v11, %v680_v14 }
 0x333   :  { %v698_v9 = vadd.f32 %v684_v11, %v678_v15  ;;  %v685_v41 = vadd.f32 %v684_v11, %v665_v22  ;;  %v687_v42 = vadd.f32 %v684_v11, %v667_v12  ;;  %v688_v43 = vadd.f32 %v684_v11, %v668_v16 }
 0x334   :  { %v710_v8 = vmax.f32 %v694_v39, 0.0  ;;  %v715_v44 = vmax.f32 %v699_v40, 0.0  ;;  %v713_v10 = vmax.f32 %v697_v4, 0.0  ;;  %v716_v45 = vmax.f32 %v700_v6, 0.0  ;;  %v1899_v39 = vld [vmem:[%s2212_s3 + $0xc0] sm:$0xff]   ;;  %v1900_v40 = vld [vmem:[%s2212_s3 + $0xc8] sm:$0xff]  }
 0x335   :  { %v714_v46 = vmax.f32 %v698_v9, 0.0  ;;  %v701_v47 = vmax.f32 %v685_v41, 0.0  ;;  %v703_v48 = vmax.f32 %v687_v42, 0.0  ;;  %v704_v49 = vmax.f32 %v688_v43, 0.0  ;;  %v1901_v4 = vld [vmem:[%s2212_s3 + $0xd0] sm:$0xff]   ;;  %v1902_v6 = vld [vmem:[%s2212_s3 + $0xd8] sm:$0xff]  }
 0x336   :  { %v719_v50 = vpack.c.bf16 %v706_v28, %v705_v25  ;;  %v720_v51 = vpack.c.bf16 %v708_v27, %v707_v24  ;;  %v721_v52 = vpack.c.bf16 %v710_v8, %v709_v33  ;;  %v722_v53 = vpack.c.bf16 %v712_v5, %v711_v30  ;;  %v1903_v9 = vld [vmem:[%s2212_s3 + $0xe0] sm:$0xff]   ;;  %v1904_v41 = vld [vmem:[%s2212_s3 + $0xe8] sm:$0xff]   ;;  %v1905_v42 = vld [vmem:[%s2212_s3 + $0xf0] sm:$0xff]  }
 0x337   :  { %v717_v54 = vpack.c.bf16 %v702_v29, %v701_v47  ;;  %v718_v55 = vpack.c.bf16 %v704_v49, %v703_v48  ;;  %v723_v57 = vpack.c.bf16 %v714_v46, %v713_v10  ;;  %v724_v58 = vpack.c.bf16 %v716_v45, %v715_v44  ;;  %v1906_v43 = vld [vmem:[%s2212_s3 + $0xf8] sm:$0xff]  }
 0x339   :  { %1730 = vmatpush3.bf16.msra.mxu1 %v717_v54  ;;  %1749 = vmatprep.subr.bf16.mxu0 %v717_v54 }
 0x33a   :  { %1750 = vmatpush3.bf16.msra.mxu0 %v717_v54  ;;  %1731 = vmatprep.subr.bf16.mxu1 %v1915_v3 }
 0x33b   :  { %1751 = vmatprep.subr.bf16.mxu0 %v718_v55 }
 0x33d   :  { %1732 = vmatpush3.bf16.msra.mxu1 %v718_v55 }
 0x33e   :  { %1752 = vmatpush3.bf16.msra.mxu0 %v718_v55  ;;  %1733 = vmatprep.subr.bf16.mxu1 %v1915_v3 }
 0x33f   :  { %1753 = vmatprep.subr.bf16.mxu0 %v719_v50 }
 0x341   :  { %1734 = vmatpush3.bf16.msra.mxu1 %v719_v50 }
 0x342   :  { %1754 = vmatpush3.bf16.msra.mxu0 %v719_v50  ;;  %1735 = vmatprep.subr.bf16.mxu1 %v1915_v3 }
 0x343   :  { %1755 = vmatprep.subr.bf16.mxu0 %v720_v51 }
 0x345   :  { %1736 = vmatpush3.bf16.msra.mxu1 %v720_v51 }
 0x346   :  { %1756 = vmatpush3.bf16.msra.mxu0 %v720_v51  ;;  %1737 = vmatprep.subr.bf16.mxu1 %v1915_v3 }
 0x347   :  { %1757 = vmatprep.subr.bf16.mxu0 %v721_v52 }
 0x349   :  { %1738 = vmatpush3.bf16.msra.mxu1 %v721_v52 }
 0x34a   :  { %1758 = vmatpush3.bf16.msra.mxu0 %v721_v52  ;;  %1739 = vmatprep.subr.bf16.mxu1 %v1915_v3 }
 0x34b   :  { %1759 = vmatprep.subr.bf16.mxu0 %v722_v53 }
 0x34d   :  { %1740 = vmatpush3.bf16.msra.mxu1 %v722_v53 }
 0x34e   :  { %1760 = vmatpush3.bf16.msra.mxu0 %v722_v53  ;;  %1741 = vmatprep.subr.bf16.mxu1 %v1915_v3 }
 0x34f   :  { %1761 = vmatprep.subr.bf16.mxu0 %v723_v57 }
 0x351   :  { %1742 = vmatpush3.bf16.msra.mxu1 %v723_v57 }
 0x352   :  { %1762 = vmatpush3.bf16.msra.mxu0 %v723_v57  ;;  %1743 = vmatprep.subr.bf16.mxu1 %v1915_v3 }
 0x353   :  { %1763 = vmatprep.subr.bf16.mxu0 %v724_v58 }
 0x355   :  { %1744 = vmatpush3.bf16.msra.mxu1 %v724_v58 }
 0x356   :  { %1764 = vmatpush3.bf16.msra.mxu0 %v724_v58  ;;  %1781 = vmatprep.subr.bf16.mxu1 %v1891_v59 }
 0x357   :  { %1813 = vmatprep.subr.bf16.mxu0 %v1899_v39 }
 0x358   :  { %1746 = vmatmul.mubr.bf16.vlgmr.msra.gmra.mrb[16].mxu1 %v2128_v60 }
 0x359   :  { %1766 = vmatmul.mubr.bf16.vlgmr.msra.gmra.mrb[32].mxu0 %v2022_v31  ;;  %1782 = vmatpush3.bf16.msra.mxu1 %v1891_v59  ;;  %v1895_v31 = vld [vmem:[%s2212_s3 + $0xa0] sm:$0xff]  }
 0x35a   :  { %1769 = vmatprep.mubr.bf16.mxu0 %v2027_v32  ;;  %1783 = vmatprep.subr.bf16.mxu1 %v1892_v62  ;;  %v1896_v32 = vld [vmem:[%s2212_s3 + $0xa8] sm:$0xff]  }
 0x35b   :  { %1814 = vmatpush3.bf16.msra.mxu0 %v1899_v39 }
 0x35c   :  { %1815 = vmatprep.subr.bf16.mxu0 %v1900_v40 }
 0x35d   :  { %1784 = vmatpush3.bf16.msra.mxu1 %v1892_v62 }
 0x35e   :  { %1785 = vmatprep.subr.bf16.mxu1 %v1893_v63 }
 0x35f   :  { %1816 = vmatpush3.bf16.msra.mxu0 %v1900_v40 }
 0x360   :  { %1817 = vmatprep.subr.bf16.mxu0 %v1901_v4 }
 0x361   :  { %1770 = vmatmul.mubr.bf16.gmra.mrb[36].mxu0 %v2037_v34  ;;  %1786 = vmatpush3.bf16.msra.mxu1 %v1893_v63  ;;  %v1897_v34 = vld [vmem:[%s2212_s3 + $0xb0] sm:$0xff]  }
 0x362   :  { %1773 = vmatprep.mubr.bf16.mxu0 %v2042_v35  ;;  %1787 = vmatprep.subr.bf16.mxu1 %v1894_v0  ;;  %v1898_v35 = vld [vmem:[%s2212_s3 + $0xb8] sm:$0xff]  }
 0x363   :  { %1818 = vmatpush3.bf16.msra.mxu0 %v1901_v4 }
 0x364   :  { %1819 = vmatprep.subr.bf16.mxu0 %v1902_v6 }
 0x365   :  { %1788 = vmatpush3.bf16.msra.mxu1 %v1894_v0 }
 0x366   :  { %1789 = vmatprep.subr.bf16.mxu1 %v1895_v31 }
 0x367   :  { %1820 = vmatpush3.bf16.msra.mxu0 %v1902_v6 }
 0x368   :  { %1821 = vmatprep.subr.bf16.mxu0 %v1903_v9 }
 0x369   :  { %1774 = vmatmul.mubr.bf16.gmra.mrb[40].mxu0 %v2049_v36  ;;  %1790 = vmatpush3.bf16.msra.mxu1 %v1895_v31 }
 0x36a   :  { %1777 = vmatprep.mubr.bf16.mxu0 %v2054_v37  ;;  %1791 = vmatprep.subr.bf16.mxu1 %v1896_v32 }
 0x36b   :  { %1822 = vmatpush3.bf16.msra.mxu0 %v1903_v9 }
 0x36c   :  { %1823 = vmatprep.subr.bf16.mxu0 %v1904_v41 }
 0x36d   :  { %1792 = vmatpush3.bf16.msra.mxu1 %v1896_v32 }
 0x36e   :  { %1793 = vmatprep.subr.bf16.mxu1 %v1897_v34 }
 0x36f   :  { %1824 = vmatpush3.bf16.msra.mxu0 %v1904_v41 }
 0x370   :  { %1825 = vmatprep.subr.bf16.mxu0 %v1905_v42 }
 0x371   :  { %1778 = vmatmul.mubr.bf16.gmra.mrb[44].mxu0 %v2061_v38  ;;  %1794 = vmatpush3.bf16.msra.mxu1 %v1897_v34 }
 0x372   :  { %1795 = vmatprep.subr.bf16.mxu1 %v1898_v35 }
 0x373   :  { %1826 = vmatpush3.bf16.msra.mxu0 %v1905_v42 }
 0x374   :  { %1827 = vmatprep.subr.bf16.mxu0 %v1906_v43 }
 0x375   :  { %1796 = vmatpush3.bf16.msra.mxu1 %v1898_v35 }
 0x376   :  { %1845 = vmatprep.subr.bf16.mxu1 %v1915_v3 }
 0x377   :  { %1828 = vmatpush3.bf16.msra.mxu0 %v1906_v43 }
 0x42b   :  { %v759_v36 = vpop.f32.mrb[16].mxu1 }
 0x42c   :  { %v1767_v37 = vpop.f32.mrb[32].mxu0  ;;  %765 = vst [vmem:[%s2215_s5] sm:$0xff] %v759_v36  ;;  %v1747_v1 = vpop.f32.mrb[17].mxu1 }
 0x42d   :  { %v800_v2 = vpop.f32.mrb[33].mxu0  ;;  %v762_v13 = vpop.f32.mrb[18].mxu1 }
 0x42e   :  { %v1768_v14 = vpop.f32.mrb[34].mxu0  ;;  %v1748_v38 = vpop.f32.mrb[19].mxu1 }
 0x42f   :  { %v883_v15 = vpack.c.bf16 %v1768_v14, %v1767_v37  ;;  %v803_v22 = vpop.f32.mrb[35].mxu0 }
 0x430   :  { %v882_v11 = vpack.c.bf16 %v803_v22, %v800_v2 }
 0x432   :  { %1797 = vmatprep.mubr.bf16.mxu1 %v882_v11 }
 0x433   :  { %1798 = vmatmul.mubr.bf16.vlgmr.msra.gmra.mrb[20].mxu1 %v883_v15 }
 0x434   :  { %v1771_v12 = vpop.f32.mrb[36].mxu0 }
 0x435   :  { %v816_v16 = vpop.f32.mrb[37].mxu0 }
 0x436   :  { %v1772_v20 = vpop.f32.mrb[38].mxu0 }
 0x437   :  { %v885_v7 = vpack.c.bf16 %v1772_v20, %v1771_v12  ;;  %v819_v18 = vpop.f32.mrb[39].mxu0 }
 0x438   :  { %v884_v21 = vpack.c.bf16 %v819_v18, %v816_v16 }
 0x43a   :  { %1801 = vmatprep.mubr.bf16.mxu1 %v884_v21 }
 0x43b   :  { %1802 = vmatmul.mubr.bf16.gmra.mrb[24].mxu1 %v885_v7  ;;  %v1485_v7 = vld [vmem:[%s2213_s4 + $0x4] sm:$0x3] }
 0x43c   :  { %v1775_v23 = vpop.f32.mrb[40].mxu0 }
 0x43d   :  { %v832_v26 = vpop.f32.mrb[41].mxu0 }
 0x43e   :  { %v1776_v17 = vpop.f32.mrb[42].mxu0 }
 0x43f   :  { %v887_v19 = vpack.c.bf16 %v1776_v17, %v1775_v23  ;;  %v835_v29 = vpop.f32.mrb[43].mxu0 }
 0x440   :  { %v886_v24 = vpack.c.bf16 %v835_v29, %v832_v26 }
 0x442   :  { %1805 = vmatprep.mubr.bf16.mxu1 %v886_v24 }
 0x443   :  { %1806 = vmatmul.mubr.bf16.gmra.mrb[28].mxu1 %v887_v19 }
 0x444   :  { %v1779_v25 = vpop.f32.mrb[44].mxu0 }
 0x445   :  { %v848_v27 = vpop.f32.mrb[45].mxu0 }
 0x446   :  { %v1780_v28 = vpop.f32.mrb[46].mxu0 }
 0x447   :  { %v889_v30 = vpack.c.bf16 %v1780_v28, %v1779_v25  ;;  %v851_v33 = vpop.f32.mrb[47].mxu0 }
 0x448   :  { %v888_v5 = vpack.c.bf16 %v851_v33, %v848_v27 }
 0x44a   :  { %1809 = vmatprep.mubr.bf16.mxu1 %v888_v5 }
 0x44b   :  { %1810 = vmatmul.mubr.bf16.gmra.mrb[32].mxu1 %v889_v30 }
 0x44c   :  { %1861 = vmatprep.mubr.msk.bf16.mxu1 %vm1916_vm0, %v1915_v3 }
 0x506   :  { %v1799_v8 = vpop.f32.mrb[20].mxu1 }
 0x507   :  { %v972_v44 = vpop.f32.mrb[21].mxu1 }
 0x508   :  { %v1800_v10 = vpop.f32.mrb[22].mxu1 }
 0x509   :  { %v975_v45 = vpop.f32.mrb[23].mxu1 }
 0x50a   :  { %v1035_v46 = vadd.f32 %v975_v45, %v972_v44 }
 0x50c   :  { %v1036_v47 = vrot.slane %v1035_v46, 4 }
 0x50e   :  { %v1037_v48 = vadd.f32 %v1036_v47, %v1035_v46  ;;  %v1803_v49 = vpop.f32.mrb[24].mxu1 }
 0x50f   :  { %v988_v50 = vpop.f32.mrb[25].mxu1 }
 0x510   :  { %v1038_v51 = vrot.slane %v1037_v48, 2  ;;  %v1804_v52 = vpop.f32.mrb[26].mxu1 }
 0x511   :  { %v991_v53 = vpop.f32.mrb[27].mxu1 }
 0x512   :  { %v1039_v54 = vadd.f32 %v1038_v51, %v1037_v48 }
 0x514   :  { %v1040_v55 = vrot.slane %v1039_v54, 1 }
 0x516   :  { %v1041_v57 = vadd.f32 %v1040_v55, %v1039_v54  ;;  %v1807_v58 = vpop.f32.mrb[28].mxu1 }
 0x517   :  { %v1004_v59 = vpop.f32.mrb[29].mxu1 }
 0x518   :  { %v1042_v62 = vmul.f32 0.0625, %v1041_v57  ;;  %v1808_v63 = vpop.f32.mrb[30].mxu1 }
 0x519   :  { %v1007_v0 = vpop.f32.mrb[31].mxu1 }
 0x51a   :  { %v1043_v31 = vsub.f32 %v972_v44, %v1042_v62  ;;  %v1044_v32 = vsub.f32 %v975_v45, %v1042_v62 }
 0x51c   :  { %v1045_v34 = vmul.f32 %v1043_v31, %v1043_v31  ;;  %v1046_v35 = vmul.f32 %v1044_v32, %v1044_v32 }
 0x51e   :  { %v1047_v36 = vadd.f32 %v1046_v35, %v1045_v34  ;;  %v1811_v37 = vpop.f32.mrb[32].mxu1 }
 0x51f   :  { %v1020_v1 = vpop.f32.mrb[33].mxu1 }
 0x520   :  { %v1048_v2 = vrot.slane %v1047_v36, 4  ;;  %v1812_v13 = vpop.f32.mrb[34].mxu1 }
 0x521   :  { %v1023_v14 = vpop.f32.mrb[35].mxu1 }
 0x522   :  { %v1049_v38 = vadd.f32 %v1048_v2, %v1047_v36 }
 0x524   :  { %v1050_v15 = vrot.slane %v1049_v38, 2 }
 0x526   :  { %v1051_v22 = vadd.f32 %v1050_v15, %v1049_v38 }
 0x528   :  { %v1052_v11 = vrot.slane %v1051_v22, 1 }
 0x52a   :  { %v1053_v12 = vadd.f32 %v1052_v11, %v1051_v22 }
 0x52c   :  { %v1054_v16 = vmul.f32 0.0625, %v1053_v12 }
 0x52e   :  { %v1055_v20 = vadd.f32 1e-05, %v1054_v16 }
 0x530   :  { %1911 = vrsqrt.f32 %v1055_v20 }
 0x53a   :  { %v1912_v18 = vpop.eup %1911 }
 0x53b   :  { %v1057_v21 = vmul.f32 %v1912_v18, %v1485_v7 }
 0x53d   :  { %v1058_v23 = vmul.f32 %v1057_v21, %v1042_v62  ;;  %v1066_v26 = vrot.slane %v1057_v21, %v2098_v56 }
 0x53f   :  { %v1060_v17 = vrot.slane %v1058_v23, 7  ;;  %v1068_v19 = vmul.f32 %v1066_v26, %v975_v45  ;;  %v1073_v29 = vmul.f32 %v1803_v49, %v1066_v26  ;;  %v1071_v24 = vmul.f32 %v1066_v26, %v988_v50 }
 0x540   :  { %v1074_v25 = vmul.f32 %v1804_v52, %v1066_v26  ;;  %v1072_v27 = vmul.f32 %v1066_v26, %v991_v53  ;;  %v1077_v28 = vmul.f32 %v1807_v58, %v1066_v26  ;;  %v1075_v30 = vmul.f32 %v1066_v26, %v1004_v59 }
 0x541   :  { %v1062_v33 = vsub.f32 %v1485_v7, %v1060_v17  ;;  %v1078_v5 = vmul.f32 %v1808_v63, %v1066_v26  ;;  %v1076_v39 = vmul.f32 %v1066_v26, %v1007_v0  ;;  %v1081_v40 = vmul.f32 %v1811_v37, %v1066_v26 }
 0x542   :  { %v1079_v4 = vmul.f32 %v1066_v26, %v1020_v1  ;;  %v1082_v6 = vmul.f32 %v1812_v13, %v1066_v26  ;;  %v1080_v9 = vmul.f32 %v1066_v26, %v1023_v14  ;;  %v1067_v41 = vmul.f32 %v1066_v26, %v972_v44 }
 0x543   :  { %v1086_v42 = vrot.slane %v1062_v33, %v2101_v61  ;;  %v1069_v43 = vmul.f32 %v1799_v8, %v1066_v26  ;;  %v1070_v46 = vmul.f32 %v1800_v10, %v1066_v26 }
 0x545   :  { %v1088_v47 = vadd.f32 %v1086_v42, %v1068_v19  ;;  %v1093_v45 = vadd.f32 %v1086_v42, %v1073_v29  ;;  %v1091_v48 = vadd.f32 %v1086_v42, %v1071_v24  ;;  %v1094_v49 = vadd.f32 %v1086_v42, %v1074_v25 }
 0x546   :  { %v1092_v50 = vadd.f32 %v1086_v42, %v1072_v27  ;;  %v1097_v51 = vadd.f32 %v1086_v42, %v1077_v28  ;;  %v1095_v52 = vadd.f32 %v1086_v42, %v1075_v30  ;;  %v1098_v53 = vadd.f32 %v1086_v42, %v1078_v5 }
 0x547   :  { %v1109_v54 = vmax.f32 %v1093_v45, 0.0  ;;  %v1107_v55 = vmax.f32 %v1091_v48, 0.0  ;;  %v1110_v57 = vmax.f32 %v1094_v49, 0.0  ;;  %v1096_v58 = vadd.f32 %v1086_v42, %v1076_v39 }
 0x548   :  { %v1108_v59 = vmax.f32 %v1092_v50, 0.0  ;;  %v1113_v62 = vmax.f32 %v1097_v51, 0.0  ;;  %v1111_v63 = vmax.f32 %v1095_v52, 0.0  ;;  %v1114_v44 = vmax.f32 %v1098_v53, 0.0 }
 0x549   :  { %v1112_v0 = vmax.f32 %v1096_v58, 0.0  ;;  %v1101_v31 = vadd.f32 %v1086_v42, %v1081_v40  ;;  %v1099_v8 = vadd.f32 %v1086_v42, %v1079_v4  ;;  %v1102_v10 = vadd.f32 %v1086_v42, %v1082_v6 }
 0x54a   :  { %v1100_v32 = vadd.f32 %v1086_v42, %v1080_v9  ;;  %v1087_v34 = vadd.f32 %v1086_v42, %v1067_v41  ;;  %v1104_v35 = vmax.f32 %v1088_v47, 0.0  ;;  %v1089_v36 = vadd.f32 %v1086_v42, %v1069_v43 }
 0x54b   :  { %v1117_v37 = vmax.f32 %v1101_v31, 0.0  ;;  %v1115_v1 = vmax.f32 %v1099_v8, 0.0  ;;  %v1118_v2 = vmax.f32 %v1102_v10, 0.0  ;;  %v1090_v13 = vadd.f32 %v1086_v42, %v1070_v46  ;;  %v1510_v31 = vld [vmem:[%s2213_s4 + $0x6] sm:$0x3] }
 0x54c   :  { %v1116_v14 = vmax.f32 %v1100_v32, 0.0  ;;  %v1103_v38 = vmax.f32 %v1087_v34, 0.0  ;;  %v1105_v15 = vmax.f32 %v1089_v36, 0.0  ;;  %v1140_v22 = vpack.c.bf16 %v1108_v59, %v1107_v55 }
 0x54d   :  { %v1106_v11 = vmax.f32 %v1090_v13, 0.0  ;;  %v1141_v12 = vpack.c.bf16 %v1110_v57, %v1109_v54  ;;  %v1142_v16 = vpack.c.bf16 %v1112_v0, %v1111_v63  ;;  %v1143_v20 = vpack.c.bf16 %v1114_v44, %v1113_v62 }
 0x54e   :  { %v1138_v7 = vpack.c.bf16 %v1104_v35, %v1103_v38  ;;  %v1144_v18 = vpack.c.bf16 %v1116_v14, %v1115_v1  ;;  %v1145_v21 = vpack.c.bf16 %v1118_v2, %v1117_v37 }
 0x54f   :  { %v1139_v23 = vpack.c.bf16 %v1106_v11, %v1105_v15 }
 0x550   :  { %1829 = vmatprep.mubr.bf16.mxu0 %v1138_v7 }
 0x551   :  { %1830 = vmatmul.mubr.bf16.vlgmr.msra.gmra.mrb[48].mxu0 %v1139_v23 }
 0x552   :  { %1833 = vmatprep.mubr.bf16.mxu0 %v1140_v22 }
 0x559   :  { %1834 = vmatmul.mubr.bf16.gmra.mrb[52].mxu0 %v1141_v12 }
 0x55a   :  { %1837 = vmatprep.mubr.bf16.mxu0 %v1142_v16 }
 0x561   :  { %1838 = vmatmul.mubr.bf16.gmra.mrb[56].mxu0 %v1143_v20 }
 0x562   :  { %1841 = vmatprep.mubr.bf16.mxu0 %v1144_v18 }
 0x569   :  { %1842 = vmatmul.mubr.bf16.gmra.mrb[60].mxu0 %v1145_v21 }
 0x624   :  { %v1831_v26 = vpop.f32.mrb[48].mxu0 }
 0x625   :  { %v1228_v17 = vpop.f32.mrb[49].mxu0 }
 0x626   :  { %v1832_v19 = vpop.f32.mrb[50].mxu0 }
 0x627   :  { %v1231_v29 = vpop.f32.mrb[51].mxu0 }
 0x628   :  { %v1291_v24 = vadd.f32 %v1231_v29, %v1228_v17 }
 0x62a   :  { %v1292_v25 = vrot.slane %v1291_v24, 4 }
 0x62c   :  { %v1293_v27 = vadd.f32 %v1292_v25, %v1291_v24  ;;  %v1835_v28 = vpop.f32.mrb[52].mxu0 }
 0x62d   :  { %v1244_v30 = vpop.f32.mrb[53].mxu0 }
 0x62e   :  { %v1294_v33 = vrot.slane %v1293_v27, 2  ;;  %v1836_v5 = vpop.f32.mrb[54].mxu0 }
 0x62f   :  { %v1247_v39 = vpop.f32.mrb[55].mxu0 }
 0x630   :  { %v1295_v40 = vadd.f32 %v1294_v33, %v1293_v27 }
 0x632   :  { %v1296_v4 = vrot.slane %v1295_v40, 1 }
 0x634   :  { %v1297_v6 = vadd.f32 %v1296_v4, %v1295_v40  ;;  %v1839_v9 = vpop.f32.mrb[56].mxu0 }
 0x635   :  { %v1260_v41 = vpop.f32.mrb[57].mxu0 }
 0x636   :  { %v1298_v42 = vmul.f32 0.0625, %v1297_v6  ;;  %v1840_v43 = vpop.f32.mrb[58].mxu0 }
 0x637   :  { %v1263_v46 = vpop.f32.mrb[59].mxu0 }
 0x638   :  { %v1299_v47 = vsub.f32 %v1228_v17, %v1298_v42  ;;  %v1300_v45 = vsub.f32 %v1231_v29, %v1298_v42 }
 0x63a   :  { %v1301_v48 = vmul.f32 %v1299_v47, %v1299_v47  ;;  %v1302_v49 = vmul.f32 %v1300_v45, %v1300_v45 }
 0x63c   :  { %v1303_v50 = vadd.f32 %v1302_v49, %v1301_v48  ;;  %v1843_v51 = vpop.f32.mrb[60].mxu0 }
 0x63d   :  { %v1276_v52 = vpop.f32.mrb[61].mxu0 }
 0x63e   :  { %v1304_v53 = vrot.slane %v1303_v50, 4  ;;  %v1844_v54 = vpop.f32.mrb[62].mxu0 }
 0x63f   :  { %v1279_v55 = vpop.f32.mrb[63].mxu0 }
 0x640   :  { %v1305_v57 = vadd.f32 %v1304_v53, %v1303_v50 }
 0x642   :  { %v1306_v58 = vrot.slane %v1305_v57, 2 }
 0x644   :  { %v1307_v59 = vadd.f32 %v1306_v58, %v1305_v57 }
 0x646   :  { %v1308_v62 = vrot.slane %v1307_v59, 1 }
 0x648   :  { %v1309_v63 = vadd.f32 %v1308_v62, %v1307_v59 }
 0x64a   :  { %v1310_v44 = vmul.f32 0.0625, %v1309_v63 }
 0x64c   :  { %v1311_v0 = vadd.f32 1e-05, %v1310_v44 }
 0x64e   :  { %1913 = vrsqrt.f32 %v1311_v0 }
 0x658   :  { %v1914_v8 = vpop.eup %1913 }
 0x659   :  { %v1313_v10 = vmul.f32 %v1914_v8, %v1510_v31 }
 0x65b   :  { %v1314_v32 = vmul.f32 %v1313_v10, %v1298_v42  ;;  %v1322_v34 = vrot.slane %v1313_v10, %v2098_v56 }
 0x65d   :  { %v1316_v35 = vrot.slane %v1314_v32, 7  ;;  %v1324_v36 = vmul.f32 %v1322_v34, %v1231_v29  ;;  %v1329_v37 = vmul.f32 %v1835_v28, %v1322_v34  ;;  %v1327_v1 = vmul.f32 %v1322_v34, %v1244_v30 }
 0x65e   :  { %v1330_v2 = vmul.f32 %v1836_v5, %v1322_v34  ;;  %v1328_v13 = vmul.f32 %v1322_v34, %v1247_v39  ;;  %v1333_v14 = vmul.f32 %v1839_v9, %v1322_v34  ;;  %v1331_v38 = vmul.f32 %v1322_v34, %v1260_v41 }
 0x65f   :  { %v1318_v15 = vsub.f32 %v1510_v31, %v1316_v35  ;;  %v1334_v22 = vmul.f32 %v1840_v43, %v1322_v34  ;;  %v1332_v11 = vmul.f32 %v1322_v34, %v1263_v46  ;;  %v1337_v12 = vmul.f32 %v1843_v51, %v1322_v34 }
 0x660   :  { %v1335_v16 = vmul.f32 %v1322_v34, %v1276_v52  ;;  %v1338_v20 = vmul.f32 %v1844_v54, %v1322_v34  ;;  %v1336_v7 = vmul.f32 %v1322_v34, %v1279_v55  ;;  %v1323_v18 = vmul.f32 %v1322_v34, %v1228_v17 }
 0x661   :  { %v1342_v21 = vrot.slane %v1318_v15, %v2101_v61  ;;  %v1325_v23 = vmul.f32 %v1831_v26, %v1322_v34  ;;  %v1326_v56 = vmul.f32 %v1832_v19, %v1322_v34 }
 0x663   :  { %v1344_v24 = vadd.f32 %v1342_v21, %v1324_v36  ;;  %v1349_v29 = vadd.f32 %v1342_v21, %v1329_v37  ;;  %v1347_v25 = vadd.f32 %v1342_v21, %v1327_v1  ;;  %v1350_v27 = vadd.f32 %v1342_v21, %v1330_v2 }
 0x664   :  { %v1348_v28 = vadd.f32 %v1342_v21, %v1328_v13  ;;  %v1353_v30 = vadd.f32 %v1342_v21, %v1333_v14  ;;  %v1351_v33 = vadd.f32 %v1342_v21, %v1331_v38  ;;  %v1354_v5 = vadd.f32 %v1342_v21, %v1334_v22 }
 0x665   :  { %v1360_v39 = vmax.f32 %v1344_v24, 0.0  ;;  %v1365_v40 = vmax.f32 %v1349_v29, 0.0  ;;  %v1363_v4 = vmax.f32 %v1347_v25, 0.0  ;;  %v1366_v6 = vmax.f32 %v1350_v27, 0.0 }
 0x666   :  { %v1364_v9 = vmax.f32 %v1348_v28, 0.0  ;;  %v1369_v41 = vmax.f32 %v1353_v30, 0.0  ;;  %v1367_v42 = vmax.f32 %v1351_v33, 0.0  ;;  %v1370_v17 = vmax.f32 %v1354_v5, 0.0 }
 0x667   :  { %v1378_v43 = vpack.c.bf16 %v1366_v6, %v1365_v40  ;;  %v1352_v61 = vadd.f32 %v1342_v21, %v1332_v11  ;;  %v1357_v26 = vadd.f32 %v1342_v21, %v1337_v12  ;;  %v1355_v19 = vadd.f32 %v1342_v21, %v1335_v16 }
 0x668   :  { %v1377_v46 = vpack.c.bf16 %v1364_v9, %v1363_v4  ;;  %v1380_v47 = vpack.c.bf16 %v1370_v17, %v1369_v41  ;;  %v1358_v45 = vadd.f32 %v1342_v21, %v1338_v20  ;;  %v1356_v48 = vadd.f32 %v1342_v21, %v1336_v7 }
 0x669   :  { %v1368_v49 = vmax.f32 %v1352_v61, 0.0  ;;  %v1373_v50 = vmax.f32 %v1357_v26, 0.0  ;;  %v1371_v51 = vmax.f32 %v1355_v19, 0.0  ;;  %v1343_v52 = vadd.f32 %v1342_v21, %v1323_v18 }
 0x66a   :  { %v1374_v53 = vmax.f32 %v1358_v45, 0.0  ;;  %v1372_v54 = vmax.f32 %v1356_v48, 0.0  ;;  %v1345_v55 = vadd.f32 %v1342_v21, %v1325_v23  ;;  %v1346_v57 = vadd.f32 %v1342_v21, %v1326_v56 }
 0x66b   :  { %v1379_v58 = vpack.c.bf16 %v1368_v49, %v1367_v42  ;;  %v1359_v59 = vmax.f32 %v1343_v52, 0.0 }
 0x66c   :  { %v1382_v62 = vpack.c.bf16 %v1374_v53, %v1373_v50  ;;  %v1381_v63 = vpack.c.bf16 %v1372_v54, %v1371_v51  ;;  %v1361_v44 = vmax.f32 %v1345_v55, 0.0  ;;  %v1362_v0 = vmax.f32 %v1346_v57, 0.0 }
 0x66d   :  { %v1375_v31 = vpack.c.bf16 %v1360_v39, %v1359_v59 }
 0x66e   :  { %v1376_v8 = vpack.c.bf16 %v1362_v0, %v1361_v44 }
 0x66f   :  { %1846 = vmatpush3.bf16.msra.mxu1 %v1375_v31 }
 0x670   :  { %1847 = vmatprep.subr.bf16.mxu1 %v1915_v3 }
 0x673   :  { %1848 = vmatpush3.bf16.msra.mxu1 %v1376_v8 }
 0x674   :  { %1849 = vmatprep.subr.bf16.mxu1 %v1915_v3 }
 0x677   :  { %1850 = vmatpush3.bf16.msra.mxu1 %v1377_v46 }
 0x678   :  { %1851 = vmatprep.subr.bf16.mxu1 %v1915_v3 }
 0x67b   :  { %1852 = vmatpush3.bf16.msra.mxu1 %v1378_v43 }
 0x67c   :  { %1853 = vmatprep.subr.bf16.mxu1 %v1915_v3 }
 0x67f   :  { %1854 = vmatpush3.bf16.msra.mxu1 %v1379_v58 }
 0x680   :  { %1855 = vmatprep.subr.bf16.mxu1 %v1915_v3 }
 0x683   :  { %1856 = vmatpush3.bf16.msra.mxu1 %v1380_v47 }
 0x684   :  { %1857 = vmatprep.subr.bf16.mxu1 %v1915_v3 }
 0x687   :  { %1858 = vmatpush3.bf16.msra.mxu1 %v1381_v63 }
 0x688   :  { %1859 = vmatprep.subr.bf16.mxu1 %v1915_v3 }
 0x68b   :  { %1860 = vmatpush3.bf16.msra.mxu1 %v1382_v62 }
 0x68e   :  { %1862 = vmatmul.mubr.bf16.vlgmr.msra.gmra.mrb[36].mxu1 %v2128_v60 }
 0x761   :  { %v1417_v10 = vpop.f32.mrb[36].mxu1 }
 0x762   :  { %1423 = vst [vmem:[%s2215_s5 + $0x8] sm:$0xff] %v1417_v10  ;;  %v1863_v32 = vpop.f32.mrb[37].mxu1 }
 0x763   :  { %v1420_v34 = vpop.f32.mrb[38].mxu1 }
 0x764   :  { %v1864_v35 = vpop.f32.mrb[39].mxu1 }

</bundles_post_ra>
